<compile_context>
chip_gen: v7x
topology: tpu7x:2x2x1
jax: 0.10.0
libtpu: 0.0.40
codegen_flags: <defaults>
</compile_context>

<pallas_src>
import functools

import jax
import jax.numpy as jnp
from jax.experimental import pallas as pl
from jax.experimental.pallas import tpu as pltpu


def _log_softmax_of_shat(x, y, t, eps):
    """x: (tb, C) f32 logits, y: (tb, C) f32 targets.

    Returns log_softmax(softmax(x / (std(x) + eps + t) - y)) row-wise.
    """
    c = x.shape[1]
    # One-pass unbiased variance: var = (sum(x^2) - sum(x)^2 / C) / (C - 1).
    s1 = jnp.sum(x, axis=1, keepdims=True)
    s2 = jnp.sum(x * x, axis=1, keepdims=True)
    var = (s2 - s1 * s1 * (1.0 / c)) * (1.0 / (c - 1))
    std = jnp.sqrt(jnp.maximum(var, 0.0)) + eps

    inv_scale = 1.0 / (std + t)                       # (tb, 1)
    z = x * inv_scale - y                             # (tb, C)

    z_max = jnp.max(z, axis=1, keepdims=True)
    ez = jnp.exp(z - z_max)
    shat = ez * (1.0 / jnp.sum(ez, axis=1, keepdims=True))

    # shat in [0, 1] -> exp(shat) in [1, e]; no max subtraction needed here.
    logp = shat - jnp.log(jnp.sum(jnp.exp(shat), axis=1, keepdims=True))
    return logp


def _snce_label_kernel(logits_ref, labels_ref, out_ref, *, t, eps, n_rows, tb):
    """Integer-label path: one-hot built in-kernel. Writes one partial sum."""
    i = pl.program_id(0)
    x = logits_ref[...].astype(jnp.float32)           # (tb, C)
    labels = labels_ref[...]                          # (tb, 1) int32

    onehot = jax.lax.broadcasted_iota(jnp.int32, x.shape, 1) == labels
    logp = _log_softmax_of_shat(x, onehot.astype(jnp.float32), t, eps)

    # CE with a one-hot target is a select, not a dense multiply.
    per_sample = -jnp.sum(jnp.where(onehot, logp, 0.0), axis=1, keepdims=True)

    # Mask padded tail rows of the last (partial) batch tile.
    row = i * tb + jax.lax.broadcasted_iota(jnp.int32, (x.shape[0], 1), 0)
    per_sample = jnp.where(row < n_rows, per_sample, 0.0)

    out_ref[...] = jnp.sum(per_sample, axis=0, keepdims=True)  # (1, 1)


def _snce_soft_kernel(logits_ref, targets_ref, out_ref, *, t, eps, n_rows, tb):
    """Soft (B, C) float-target path. Writes one partial sum per grid step."""
    i = pl.program_id(0)
    x = logits_ref[...].astype(jnp.float32)            # (tb, C)
    y = targets_ref[...].astype(jnp.float32)           # (tb, C)

    logp = _log_softmax_of_shat(x, y, t, eps)
    per_sample = -jnp.sum(y * logp, axis=1, keepdims=True)

    row = i * tb + jax.lax.broadcasted_iota(jnp.int32, (x.shape[0], 1), 0)
    per_sample = jnp.where(row < n_rows, per_sample, 0.0)

    out_ref[...] = jnp.sum(per_sample, axis=0, keepdims=True)  # (1, 1)


def _pick_batch_tile(b, c):
    """Largest multiple-of-8 row tile with ~2 MiB per pipelined logits buffer."""
    if b <= 8:
        return b                                   # block == full array dims
    target_block_bytes = 2 * 1024 * 1024           # per double-buffered input
    rows = max(8, target_block_bytes // (c * 4))
    rows = min(rows, 8192, ((b + 7) // 8) * 8)
    return max(8, (rows // 8) * 8)


def self_normalizing_cross_entropy(logits, targets, t=0.1, eps=1e-8):
    """logits: (B, C) floats; targets: (B,) int labels or (B, C) float probs."""
    B, C = logits.shape
    tb = _pick_batch_tile(B, C)
    n_tiles = pl.cdiv(B, tb)
    grid = (n_tiles,)

    logits_spec = pl.BlockSpec((tb, C), lambda i: (i, 0))
    out_spec = pl.BlockSpec((None, 1, 1), lambda i: (i, 0, 0))
    out_shape = jax.ShapeDtypeStruct((n_tiles, 1, 1), jnp.float32)
    cparams = pltpu.CompilerParams(
        dimension_semantics=("parallel",),          # batch tiles are independent
        vmem_limit_bytes=48 * 1024 * 1024,          # safe on v5e/v6e/v7x
    )
    common = dict(t=float(t), eps=float(eps), n_rows=B, tb=tb)

    if targets.ndim == 1:
        tgt = targets.astype(jnp.int32).reshape(B, 1)
        tgt_spec = pl.BlockSpec((tb, 1), lambda i: (i, 0))
        kernel = functools.partial(_snce_label_kernel, **common)
    else:
        tgt = targets.astype(jnp.float32)
        tgt_spec = pl.BlockSpec((tb, C), lambda i: (i, 0))
        kernel = functools.partial(_snce_soft_kernel, **common)

    partials = pl.pallas_call(
        kernel,
        out_shape=out_shape,
        grid_spec=pltpu.PrefetchScalarGridSpec(
            num_scalar_prefetch=0,
            grid=grid,
            in_specs=[logits_spec, tgt_spec],
            out_specs=out_spec,
        ),
        compiler_params=cparams,
    )(logits, tgt)

    return jnp.sum(partials) / jnp.float32(B)


def _reference(logits, targets, t=0.1, eps=1e-8):
    """Pure-JAX reference mirroring the PyTorch module."""
    B, C = logits.shape
    if targets.ndim == 1:
        targets = jax.nn.one_hot(targets, C, dtype=jnp.float32)
    else:
        targets = targets.astype(jnp.float32)
    x = logits.astype(jnp.float32)
    std = jnp.std(x, axis=1, ddof=1, keepdims=True) + eps
    shat = jax.nn.softmax(x / (std + t) - targets, axis=1)
    logp = jax.nn.log_softmax(shat, axis=1)
    return jnp.mean(-jnp.sum(targets * logp, axis=1))


if __name__ == "__main__":
    key = jax.random.PRNGKey(0)
    k1, k2, k3, k4 = jax.random.split(key, 4)

    # 1) Integer-label path (the common case).
    B, C = 8, 16
    logits = jax.random.normal(k1, (B, C), dtype=jnp.float32)
    labels = jax.random.randint(k2, (B,), 0, C, dtype=jnp.int32)
    loss = jax.block_until_ready(self_normalizing_cross_entropy(logits, labels, t=0.1))
    ref = _reference(logits, labels, t=0.1)
    assert jnp.allclose(loss, ref, rtol=1e-5, atol=1e-5), (loss, ref)

    # 2) Soft (B, C) float targets.
    soft = jax.nn.softmax(jax.random.normal(k3, (B, C), dtype=jnp.float32), axis=1)
    loss = jax.block_until_ready(self_normalizing_cross_entropy(logits, soft, t=0.1))
    ref = _reference(logits, soft, t=0.1)
    assert jnp.allclose(loss, ref, rtol=1e-5, atol=1e-5), (loss, ref)

    # 3) Batch not a multiple of the tile (exercises in-kernel tail masking).
    B2 = 12
    logits2 = jax.random.normal(k4, (B2, C), dtype=jnp.float32)
    labels2 = jax.random.randint(k2, (B2,), 0, C, dtype=jnp.int32)
    loss = jax.block_until_ready(self_normalizing_cross_entropy(logits2, labels2, t=0.1))
    ref = _reference(logits2, labels2, t=0.1)
    assert jnp.allclose(loss, ref, rtol=1e-5, atol=1e-5), (loss, ref)

    print("KERNEL_OK")
</pallas_src>

<mosaic_0001>
module attributes {stable_mosaic.version = 11 : i64} {
  func.func @_snce_label_kernel(%arg0: i32, %arg1: memref<8x16xf32, #tpu.memory_space<vmem>>, %arg2: memref<8x1xi32, #tpu.memory_space<vmem>>, %arg3: memref<1x1x1xf32, #tpu.memory_space<vmem>>) attributes {dimension_semantics = [#tpu.dimension_semantics<parallel>], iteration_bounds = array<i64: 1>, scalar_prefetch = 0 : i64, scratch_operands = 0 : i64, tpu.core_type = #tpu.core_type<tc>, window_params = [{transform_indices = @transform_0, window_bounds = array<i64: 8, 16>}, {transform_indices = @transform_1, window_bounds = array<i64: 8, 1>}, {transform_indices = @transform_2, window_bounds = array<i64: 1, 1, 1>}]} {
    %c0 = arith.constant 0 : index
    %c0_0 = arith.constant 0 : index
    %0 = vector.load %arg1[%c0, %c0_0] : memref<8x16xf32, #tpu.memory_space<vmem>>, vector<8x16xf32>
    %c0_1 = arith.constant 0 : index
    %c0_2 = arith.constant 0 : index
    %1 = vector.load %arg2[%c0_1, %c0_2] : memref<8x1xi32, #tpu.memory_space<vmem>>, vector<8x1xi32>
    %2 = tpu.iota {dimensions = array<i32: 1>} : vector<8x16xi32>
    %3 = vector.broadcast %1 : vector<8x1xi32> to vector<8x16xi32>
    %4 = arith.cmpi eq, %2, %3 : vector<8x16xi32>
    %5 = arith.extui %4 : vector<8x16xi1> to vector<8x16xi32>
    %6 = arith.sitofp %5 : vector<8x16xi32> to vector<8x16xf32>
    %cst = arith.constant dense<0.000000e+00> : vector<8xf32>
    %7 = vector.multi_reduction <add>, %0, %cst [1] : vector<8x16xf32> to vector<8xf32>
    %8 = vector.shape_cast %7 : vector<8xf32> to vector<8x1xf32>
    %9 = arith.mulf %0, %0 : vector<8x16xf32>
    %cst_3 = arith.constant dense<0.000000e+00> : vector<8xf32>
    %10 = vector.multi_reduction <add>, %9, %cst_3 [1] : vector<8x16xf32> to vector<8xf32>
    %11 = vector.shape_cast %10 : vector<8xf32> to vector<8x1xf32>
    %12 = arith.mulf %8, %8 : vector<8x1xf32>
    %cst_4 = arith.constant 6.250000e-02 : f32
    %13 = vector.broadcast %cst_4 : f32 to vector<8x1xf32>
    %14 = arith.mulf %12, %13 : vector<8x1xf32>
    %15 = arith.subf %11, %14 : vector<8x1xf32>
    %cst_5 = arith.constant 0.0666666701 : f32
    %16 = vector.broadcast %cst_5 : f32 to vector<8x1xf32>
    %17 = arith.mulf %15, %16 : vector<8x1xf32>
    %cst_6 = arith.constant 0.000000e+00 : f32
    %18 = vector.broadcast %cst_6 : f32 to vector<8x1xf32>
    %19 = arith.maximumf %17, %18 : vector<8x1xf32>
    %20 = math.sqrt %19 : vector<8x1xf32>
    %cst_7 = arith.constant 9.99999993E-9 : f32
    %21 = vector.broadcast %cst_7 : f32 to vector<8x1xf32>
    %22 = arith.addf %20, %21 : vector<8x1xf32>
    %cst_8 = arith.constant 1.000000e-01 : f32
    %23 = vector.broadcast %cst_8 : f32 to vector<8x1xf32>
    %24 = arith.addf %22, %23 : vector<8x1xf32>
    %cst_9 = arith.constant 1.000000e+00 : f32
    %25 = vector.broadcast %cst_9 : f32 to vector<8x1xf32>
    %26 = arith.divf %25, %24 : vector<8x1xf32>
    %27 = vector.broadcast %26 : vector<8x1xf32> to vector<8x16xf32>
    %28 = arith.mulf %0, %27 : vector<8x16xf32>
    %29 = arith.subf %28, %6 : vector<8x16xf32>
    %cst_10 = arith.constant dense<0xFF800000> : vector<8xf32>
    %30 = vector.multi_reduction <maximumf>, %29, %cst_10 [1] : vector<8x16xf32> to vector<8xf32>
    %31 = vector.shape_cast %30 : vector<8xf32> to vector<8x1xf32>
    %32 = vector.broadcast %31 : vector<8x1xf32> to vector<8x16xf32>
    %33 = arith.subf %29, %32 : vector<8x16xf32>
    %34 = math.exp %33 : vector<8x16xf32>
    %cst_11 = arith.constant dense<0.000000e+00> : vector<8xf32>
    %35 = vector.multi_reduction <add>, %34, %cst_11 [1] : vector<8x16xf32> to vector<8xf32>
    %36 = vector.shape_cast %35 : vector<8xf32> to vector<8x1xf32>
    %cst_12 = arith.constant 1.000000e+00 : f32
    %37 = vector.broadcast %cst_12 : f32 to vector<8x1xf32>
    %38 = arith.divf %37, %36 : vector<8x1xf32>
    %39 = vector.broadcast %38 : vector<8x1xf32> to vector<8x16xf32>
    %40 = arith.mulf %34, %39 : vector<8x16xf32>
    %41 = math.exp %40 : vector<8x16xf32>
    %cst_13 = arith.constant dense<0.000000e+00> : vector<8xf32>
    %42 = vector.multi_reduction <add>, %41, %cst_13 [1] : vector<8x16xf32> to vector<8xf32>
    %43 = vector.shape_cast %42 : vector<8xf32> to vector<8x1xf32>
    %44 = math.log %43 : vector<8x1xf32>
    %45 = vector.broadcast %44 : vector<8x1xf32> to vector<8x16xf32>
    %46 = arith.subf %40, %45 : vector<8x16xf32>
    %cst_14 = arith.constant 0.000000e+00 : f32
    %47 = vector.broadcast %cst_14 : f32 to vector<8x16xf32>
    %48 = arith.select %4, %46, %47 : vector<8x16xi1>, vector<8x16xf32>
    %cst_15 = arith.constant dense<0.000000e+00> : vector<8xf32>
    %49 = vector.multi_reduction <add>, %48, %cst_15 [1] : vector<8x16xf32> to vector<8xf32>
    %50 = vector.shape_cast %49 : vector<8xf32> to vector<8x1xf32>
    %cst_16 = arith.constant 0.000000e+00 : f32
    %51 = vector.broadcast %cst_16 : f32 to vector<8x1xf32>
    %52 = arith.subf %51, %50 : vector<8x1xf32>
    %c8_i32 = arith.constant 8 : i32
    %53 = arith.muli %arg0, %c8_i32 : i32
    %54 = tpu.iota {dimensions = array<i32: 0>} : vector<8x1xi32>
    %55 = vector.broadcast %53 : i32 to vector<8x1xi32>
    %56 = arith.addi %55, %54 : vector<8x1xi32>
    %c8_i32_17 = arith.constant 8 : i32
    %57 = vector.broadcast %c8_i32_17 : i32 to vector<8x1xi32>
    %58 = arith.cmpi slt, %56, %57 : vector<8x1xi32>
    %cst_18 = arith.constant 0.000000e+00 : f32
    %59 = vector.broadcast %cst_18 : f32 to vector<8x1xf32>
    %60 = arith.select %58, %52, %59 : vector<8x1xi1>, vector<8x1xf32>
    %cst_19 = arith.constant dense<0.000000e+00> : vector<1xf32>
    %61 = vector.multi_reduction <add>, %60, %cst_19 [0] : vector<8x1xf32> to vector<1xf32>
    %62 = vector.shape_cast %61 : vector<1xf32> to vector<1x1xf32>
    %c0_20 = arith.constant 0 : index
    %c0_21 = arith.constant 0 : index
    %c0_22 = arith.constant 0 : index
    %63 = vector.load %arg3[%c0_20, %c0_21, %c0_22] : memref<1x1x1xf32, #tpu.memory_space<vmem>>, vector<1x1x1xf32>
    %64 = vector.shape_cast %63 : vector<1x1x1xf32> to vector<1x1xf32>
    %65 = vector.shape_cast %62 : vector<1x1xf32> to vector<1x1x1xf32>
    tpu.vector_store %arg3[%c0_20, %c0_21, %c0_22], %65 {strides = array<i32>} : memref<1x1x1xf32, #tpu.memory_space<vmem>>, vector<1x1x1xf32>,
    return
  }
  func.func @transform_0(%arg0: i32) -> (i32, i32) {
    %c0_i32 = arith.constant 0 : i32
    %c0_i32_0 = arith.constant 0 : i32
    return %arg0, %c0_i32 : i32, i32
  }
  func.func @transform_1(%arg0: i32) -> (i32, i32) {
    %c0_i32 = arith.constant 0 : i32
    %c0_i32_0 = arith.constant 0 : i32
    return %arg0, %c0_i32 : i32, i32
  }
  func.func @transform_2(%arg0: i32) -> (i32, i32, i32) {
    %c0_i32 = arith.constant 0 : i32
    %c0_i32_0 = arith.constant 0 : i32
    %c0_i32_1 = arith.constant 0 : i32
    return %arg0, %c0_i32, %c0_i32_0 : i32, i32, i32
  }
}

</mosaic_0001>

<bundles_post_ra>
// kernel: tpu_custom_call.1
= control target key start
LH: loop header
LB: loop body
LE: loop exit
PB: predicated region body
PF: predicated region fallthrough
CT: control target
= control target key end

     0   :  { %vm22_vm0 = vcmask 130048   ;;  %s188_s0 = inlined_call_operand.vmem [shape: f32[8,16], index: 0, kind: input, shape index: {}]   ;;  %s189_s1 = inlined_call_operand.vmem [shape: s32[8,1], index: 1, kind: input, shape index: {}]   ;;  %s190_s2 = inlined_call_operand.hbm [shape: f32[1,1,1], index: 2, kind: output, shape index: {}]  }
   0x1   :  { %v12_v0 = vld [vmem:[%s188_s0] sm:$0xff] }
   0x2   :  { %v13_v1 = vld [vmem:[%s189_s1] sm:$0xff] }
   0x3   :  { %7 = vsyncpa [#allocation3], 0  ;;  %v23_v2 = vsel %vm22_vm0, %v12_v0, 0.0  ;;  %v26_v3 = vmul.f32 %v12_v0, %v12_v0  ;;  %v144_v4 = vmov 0   ;;  %v14_v20 = vlaneseq  ;;  %s146_s0 = smov [#allocation2]  }
   0x4   :  { %106 = vset.pattern.permute.xlu1 %v144_v4  ;;  %107 = vset.pattern.permute.xlu0 %v144_v4  ;;  %v145_v24 = vmov 0.0   ;;  %s94_s1 = sshll.u32 %s146_s0, 4  ;;  %vm86_vm4 = vcmask 0   ;;  %s95_s1 = int_to_ptr.vmem [resolvable:$true] %s94_s1 }
   0x5   :  { %24 = vadd.xlane.f32.xlu0 %v23_v2  ;;  %17 = vperm.xlu1 %106, %v13_v1   ;;  %v27_v5 = vsel %vm22_vm0, %v26_v3, 0.0  ;;  %v15_v21 = vand.u32 127, %v14_v20  ;;  %s120_s13 = scalar_lea.vmem %s95_s1, 16  ;;  %s124_s14 = scalar_lea.vmem %s95_s1, 32 }
   0x6   :  { %p121_p0 = scmp.ne.s32.totalorder %s95_s1, %s120_s13  ;;  %p125_p1 = scmp.lt.s32.totalorder %s95_s1, %s95_s1 }
   0x7   :  { %p126_p2 = scmp.lt.s32.totalorder %s124_s14, %s120_s13 }
   0x9   :  { %28 = vadd.xlane.f32.xlu0 %v27_v5  ;;  %p127_p3 = por %p126_p2, %p125_p1 }
   0xb   :  { %p128_p4 = pnand %p127_p3, %p121_p0 }
  0x84   :  { %v18_v22 = vpop.permute.xlu1 %17 }
  0x85   :  { %vm19_vm3 = vcmp.eq.s32.totalorder %v15_v21, %v18_v22 }
  0x86   :  { %v102_v25 = vsel %vm19_vm3, 1.0, %v145_v24 }
  0x92   :  { %v25_v6 = vpop.xlane.xlu0 %24 }
  0x93   :  { %v30_v7 = vmul.f32 %v25_v6, %v25_v6 }
  0x95   :  { %v31_v8 = vmul.f32 0.0625, %v30_v7 }
  0x96   :  { %v29_v9 = vpop.xlane.xlu0 %28 }
  0x97   :  { %v32_v10 = vsub.f32 %v29_v9, %v31_v8 }
  0x99   :  { %v33_v11 = vmul.f32 0.06666667, %v32_v10 }
  0x9b   :  { %v34_v12 = vmax.f32 %v33_v11, 0.0 }
  0x9d   :  { %108 = vrsqrt.f32 %v34_v12  ;;  %vm37_vm1 = vcmp.eq.f32.partialorder %v34_v12, inf  ;;  %v40_v15 = vand.u32 2147483648, %v34_v12  ;;  %vm39_vm2 = vcmp.eq.f32.partialorder %v34_v12, 0.0 }
  0xa7   :  { %v109_v13 = vpop.eup %108 }
  0xa8   :  { %v36_v14 = vmul.f32 %v109_v13, %v34_v12 }
  0xaa   :  { %v38_v16 = vsel %vm37_vm1, %v34_v12, %v36_v14 }
  0xab   :  { %v41_v17 = vsel %vm39_vm2, %v40_v15, %v38_v16 }
  0xac   :  { %v42_v18 = vadd.f32 1e-08, %v41_v17 }
  0xae   :  { %v43_v19 = vadd.f32 0.1, %v42_v18 }
  0xb0   :  { %110 = vrcp.f32 %v43_v19 }
  0xba   :  { %v111_v23 = vpop.eup %110 }
  0xbb   :  { %v46_v26 = vmul.f32 %v111_v23, %v12_v0 }
  0xbd   :  { %v47_v27 = vsub.f32 %v46_v26, %v102_v25 }
  0xbf   :  { %v48_v28 = vsel %vm22_vm0, %v47_v27, -inf }
  0xc0   :  { %49 = vmax.xlane.f32.xlu1 %v48_v28 }
 0x14d   :  { %v50_v29 = vpop.xlane.xlu1 %49 }
 0x14e   :  { %v51_v30 = vsub.f32 %v47_v27, %v50_v29 }
 0x150   :  { %v52_v31 = vmul.f32 1.442695, %v51_v30 }
 0x152   :  { %112 = vpow2.f32 %v52_v31 }
 0x15c   :  { %v113_v32 = vpop.eup %112 }
 0x15d   :  { %v54_v33 = vsel %vm22_vm0, %v113_v32, 0.0 }
 0x15e   :  { %55 = vadd.xlane.f32.xlu0 %v54_v33 }
 0x1eb   :  { %v56_v34 = vpop.xlane.xlu0 %55 }
 0x1ec   :  { %114 = vrcp.f32 %v56_v34 }
 0x1f6   :  { %v115_v35 = vpop.eup %114 }
 0x1f7   :  { %v59_v36 = vmul.f32 %v115_v35, %v113_v32 }
 0x1f9   :  { %v60_v37 = vmul.f32 1.442695, %v59_v36 }
 0x1fb   :  { %116 = vpow2.f32 %v60_v37 }
 0x205   :  { %v117_v38 = vpop.eup %116 }
 0x206   :  { %v62_v39 = vsel %vm22_vm0, %v117_v38, 0.0 }
 0x207   :  { %63 = vadd.xlane.f32.xlu0 %v62_v39 }
 0x294   :  { %v64_v40 = vpop.xlane.xlu0 %63 }
 0x295   :  { %118 = vlog2.f32 %v64_v40 }
 0x29f   :  { %v119_v41 = vpop.eup %118 }
 0x2a0   :  { %v66_v42 = vmul.f32 0.6931472, %v119_v41 }
 0x2a2   :  { %v67_v43 = vsub.f32 %v59_v36, %v66_v42 }
 0x2a4   :  { %v68_v44 = vsel %vm19_vm3, %v67_v43, 0.0 }
 0x2a5   :  { %v69_v45 = vsel %vm22_vm0, %v68_v44, 0.0 }
 0x2a6   :  { %70 = vadd.xlane.f32.xlu0 %v69_v45 }
 0x333   :  { %v71_v46 = vpop.xlane.xlu0 %70 }
 0x334   :  { %v72_v47 = vsub.f32 0.0, %v71_v46 }
 0x336   :  { %v80_v48 = vrot.slane %v72_v47, 4 }
 0x338   :  { %v81_v49 = vadd.f32 %v80_v48, %v72_v47 }
 0x33a   :  { %v82_v50 = vrot.slane %v81_v49, 2 }
 0x33c   :  { %v83_v51 = vadd.f32 %v82_v50, %v81_v49 }
 0x33e   :  { %v84_v52 = vrot.slane %v83_v51, 1 }
 0x340   :  { %v85_v53 = vadd.f32 %v84_v52, %v83_v51 }
 0x342   :  { %87 = vst.msk [vmem:[#allocation2] sm:$0x1] %vm86_vm4, %v85_v53 }
 0x343   :  { %131 = shalt.err (!%p128_p4)
}
 0x344   :  { %s132_s17 = scalar_lea.hbm %s190_s2, 16 }
 0x345   :  { %p133_p5 = scmp.ne.s32.totalorder %s190_s2, %s132_s17  ;;  %p136_p6 = scmp.lt.u32.totalorder %s132_s17, %s190_s2 }
 0x347   :  { %p138_p7 = pnand %p136_p6, %p133_p5 }
 0x349   :  { %141 = shalt.err (!%p138_p7)
}
 0x34a   :  { %97 = dma.vmem_to_hbm [thread:$0]  %s95_s1, 16, %s190_s2, [#allocation3]  }
 0x34b   :  { %142 = dma.done.wait [#allocation3], 16  }
 0x34c   :  { %143 = vsyncadd [#allocation3], 4294967280 }
 0x34d   :  { %101 = vsyncpa [#allocation3], 1 }

</bundles_post_ra>
